<compile_context>
chip_gen: v6e
topology: v6e:2x2x1
jax: 0.10.0
libtpu: 0.0.40
codegen_flags: <defaults>
</compile_context>

<pallas_src>
import functools

import jax
import jax.numpy as jnp
from jax import lax
from jax.experimental import pallas as pl
from jax.experimental.pallas import tpu as pltpu

DIM = 128
LN_EPS = 1e-5
_INV_SQRT2 = 0.7071067811865476       # 1/sqrt(2): constant multiply, not a divide
_SQRT_2_OVER_PI = 0.7978845608028654


def _gelu_exact(x):
    # PyTorch nn.GELU() default: exact erf-based GELU.
    return 0.5 * x * (1.0 + lax.erf(x * jnp.float32(_INV_SQRT2)))


def _gelu_tanh(x):
    # tanh approximation: transcendental goes to the EUP slot (cheap VALU footprint).
    return 0.5 * x * (1.0 + jnp.tanh(jnp.float32(_SQRT_2_OVER_PI)
                                     * (x + 0.044715 * x * x * x)))


def _ffn_kernel(x_ref, g_ref, b_ref, w1_ref, b1_ref, w2_ref, b2_ref, o_ref, *, gelu):
    x = x_ref[...].astype(jnp.float32)                       # (bm, D)

    # LayerNorm over the last dim (affine, eps=1e-5), f32 math.
    # Independent E[x] and E[x^2] reductions; var = E[x^2] - mean^2 (clamped >= 0
    # to stay robust for near-constant rows).
    mean = jnp.mean(x, axis=-1, keepdims=True)
    mean_sq = jnp.mean(x * x, axis=-1, keepdims=True)
    var = jnp.maximum(mean_sq - mean * mean, 0.0)
    xhat = (x - mean) * lax.rsqrt(var + LN_EPS)
    h = xhat * g_ref[...].astype(jnp.float32) + b_ref[...].astype(jnp.float32)

    # Linear(D -> H): MXU operands in the stored weight dtype (bf16 default),
    # f32 accumulation, f32 bias add, GELU in f32.
    w1 = w1_ref[...]
    h1 = jnp.dot(h.astype(w1.dtype), w1, preferred_element_type=jnp.float32)
    h1 = gelu(h1 + b1_ref[...].astype(jnp.float32))

    # Linear(H -> D)
    w2 = w2_ref[...]
    h2 = jnp.dot(h1.astype(w2.dtype), w2, preferred_element_type=jnp.float32)
    h2 = gelu(h2 + b2_ref[...].astype(jnp.float32))

    o_ref[...] = h2.astype(o_ref.dtype)


def _round_up(n, m):
    return ((n + m - 1) // m) * m


def _cdiv(a, b):
    return -(-a // b)


@functools.lru_cache(maxsize=1)
def _tensorcores_per_chip():
    """1 on v5e/v6e, 2 on v7x (best-effort detection; safe fallback of 1)."""
    try:
        kind = getattr(jax.devices()[0], "device_kind", "").lower()
        if "v7" in kind or "7x" in kind:
            return 2
    except Exception:  # noqa: BLE001 - any failure just means "assume single TC"
        pass
    return 1


def _choose_block_rows(rows, requested, num_tc):
    """Row-block size.

    Multiple of 16 (bf16 sublane packing).  On 2-TC parts, cap the block so the
    parallel grid axis has >= min(8, rows/16) steps for load balancing.  On 1-TC
    parts small inputs get a single full-array block (no per-step overhead).
    """
    bm = max(16, (requested // 16) * 16)
    if num_tc > 1 and rows > 16:
        target_steps = min(8, max(2, _cdiv(rows, 16)))
        bm = min(bm, max(16, _round_up(_cdiv(rows, target_steps), 16)))
    if bm >= rows:
        bm = rows              # single block equal to the full array dim (always legal)
    return bm


@functools.partial(
    jax.jit,
    static_argnames=("block_rows", "gelu_approx", "input_buffers", "vmem_limit_bytes"))
def feed_forward(x, params, *, block_rows=1024, gelu_approx=False, input_buffers=2,
                 vmem_limit_bytes=32 * 1024 * 1024):
    """x: [..., D]. params: dict of LN/Linear weights (linear weights pre-transposed).

    Output dtype follows x.dtype, so bf16 activations in -> bf16 out (half the
    activation HBM traffic); internal LN/GELU math is f32 regardless.
    """
    gamma, beta = params["ln_w"], params["ln_b"]
    w1, b1 = params["w1"], params["b1"]          # w1: (D, H) = W1^T
    w2, b2 = params["w2"], params["b2"]          # w2: (H, D) = W2^T

    orig_shape = x.shape
    d = orig_shape[-1]
    h = w1.shape[1]
    x2 = x.reshape(-1, d)                        # layout-preserving, no HBM copy
    rows = x2.shape[0]

    bm = _choose_block_rows(rows, block_rows, _tensorcores_per_chip())
    steps = _cdiv(rows, bm)                      # last block may be partial (ragged)

    if input_buffers > 2:
        x_spec = pl.BlockSpec((bm, d), lambda i: (i, 0),
                              pipeline_mode=pl.Buffered(input_buffers))
    else:
        x_spec = pl.BlockSpec((bm, d), lambda i: (i, 0))

    gelu = _gelu_tanh if gelu_approx else _gelu_exact

    out = pl.pallas_call(
        functools.partial(_ffn_kernel, gelu=gelu),
        out_shape=jax.ShapeDtypeStruct((rows, d), x.dtype),
        grid_spec=pltpu.PrefetchScalarGridSpec(
            num_scalar_prefetch=0,
            grid=(steps,),
            in_specs=[
                x_spec,                                    # x rows
                pl.BlockSpec((1, d), lambda i: (0, 0)),    # LN gamma
                pl.BlockSpec((1, d), lambda i: (0, 0)),    # LN beta
                pl.BlockSpec((d, h), lambda i: (0, 0)),    # W1^T (constant -> resident)
                pl.BlockSpec((1, h), lambda i: (0, 0)),    # b1
                pl.BlockSpec((h, d), lambda i: (0, 0)),    # W2^T
                pl.BlockSpec((1, d), lambda i: (0, 0)),    # b2
            ],
            out_specs=pl.BlockSpec((bm, d), lambda i: (i, 0)),
        ),
        compiler_params=pltpu.CompilerParams(
            dimension_semantics=("parallel",),
            vmem_limit_bytes=vmem_limit_bytes),
    )(x2, gamma.reshape(1, d), beta.reshape(1, d),
      w1, b1.reshape(1, h), w2, b2.reshape(1, d))

    return out.reshape(orig_shape)


def init_params(key, dim=DIM, hidden_dim=None, matmul_dtype=jnp.bfloat16):
    hidden_dim = hidden_dim if hidden_dim is not None else dim
    k1, k2, k3, k4 = jax.random.split(key, 4)
    # nn.Linear default init: U(-1/sqrt(fan_in), 1/sqrt(fan_in)) for W and b.
    lim1 = dim ** -0.5
    lim2 = hidden_dim ** -0.5
    return {
        "ln_w": jnp.ones((dim,), jnp.float32),
        "ln_b": jnp.zeros((dim,), jnp.float32),
        # Transposed weights (in_features, out_features); stored in matmul_dtype so the
        # MXU sees bf16 operands (f32 accumulation happens in the kernel).
        "w1": jax.random.uniform(k1, (dim, hidden_dim), jnp.float32,
                                 -lim1, lim1).astype(matmul_dtype),
        "b1": jax.random.uniform(k2, (hidden_dim,), jnp.float32, -lim1, lim1),
        "w2": jax.random.uniform(k3, (hidden_dim, dim), jnp.float32,
                                 -lim2, lim2).astype(matmul_dtype),
        "b2": jax.random.uniform(k4, (dim,), jnp.float32, -lim2, lim2),
    }


def _reference(x, p):
    """Pure-JAX reference (two-pass LN, exact-erf GELU), f32 math."""
    w1 = p["w1"].astype(jnp.float32)
    w2 = p["w2"].astype(jnp.float32)
    mean = jnp.mean(x, axis=-1, keepdims=True)
    var = jnp.mean((x - mean) ** 2, axis=-1, keepdims=True)
    h = (x - mean) * lax.rsqrt(var + LN_EPS) * p["ln_w"] + p["ln_b"]
    h1 = _gelu_exact(h @ w1 + p["b1"])
    h2 = _gelu_exact(h1 @ w2 + p["b2"])
    return h2


if __name__ == "__main__":
    key = jax.random.PRNGKey(0)
    kx, kp = jax.random.split(key)
    B, S, D = 2, 8, DIM
    x = jax.random.normal(kx, (B, S, D), jnp.float32)

    # 1) Default path: bf16 MXU weight operands, f32 activations in/out.
    params_bf16 = init_params(kp, dim=D)
    out = jax.block_until_ready(feed_forward(x, params_bf16))
    ref = _reference(x, params_bf16)
    assert out.shape == x.shape and out.dtype == x.dtype
    err = float(jnp.max(jnp.abs(out - ref)))
    assert jnp.allclose(out, ref, atol=2e-2, rtol=2e-2), err

    # 2) Full-f32 path on a row count that is NOT a multiple of the block size:
    #    exercises the in-kernel ragged-tail handling (partial last block; no host
    #    pad/slice) and the tight LN / erf-GELU / matmul semantics.
    x_rag = jax.random.normal(kx, (3, 7, D), jnp.float32)   # rows = 21
    params_f32 = jax.tree_util.tree_map(lambda a: a.astype(jnp.float32), params_bf16)
    out32 = jax.block_until_ready(feed_forward(x_rag, params_f32, block_rows=16))
    ref32 = _reference(x_rag, params_f32)
    err32 = float(jnp.max(jnp.abs(out32 - ref32)))
    assert out32.shape == x_rag.shape
    assert jnp.allclose(out32, ref32, atol=3e-5, rtol=3e-5), err32

    # 3) bf16 activations in -> bf16 out (halves activation HBM traffic).
    x_bf16 = x.astype(jnp.bfloat16)
    out_bf = jax.block_until_ready(feed_forward(x_bf16, params_bf16))
    assert out_bf.dtype == jnp.bfloat16 and out_bf.shape == x.shape
    ref_bf = _reference(x_bf16.astype(jnp.float32), params_bf16)
    err_bf = float(jnp.max(jnp.abs(out_bf.astype(jnp.float32) - ref_bf)))
    assert jnp.allclose(out_bf.astype(jnp.float32), ref_bf, atol=5e-2, rtol=5e-2), err_bf

    print("KERNEL_OK")
</pallas_src>

<mosaic_0001>
module attributes {stable_mosaic.version = 11 : i64} {
  func.func @_ffn_kernel(%arg0: i32, %arg1: memref<16x128xf32, #tpu.memory_space<vmem>>, %arg2: memref<1x128xf32, #tpu.memory_space<vmem>>, %arg3: memref<1x128xf32, #tpu.memory_space<vmem>>, %arg4: memref<128x128xbf16, #tpu.memory_space<vmem>>, %arg5: memref<1x128xf32, #tpu.memory_space<vmem>>, %arg6: memref<128x128xbf16, #tpu.memory_space<vmem>>, %arg7: memref<1x128xf32, #tpu.memory_space<vmem>>, %arg8: memref<16x128xf32, #tpu.memory_space<vmem>>) attributes {dimension_semantics = [#tpu.dimension_semantics<parallel>], iteration_bounds = array<i64: 1>, scalar_prefetch = 0 : i64, scratch_operands = 0 : i64, tpu.core_type = #tpu.core_type<tc>, window_params = [{transform_indices = @transform_0, window_bounds = array<i64: 16, 128>}, {pipeline_mode = #tpu.pipeline_mode<synchronous>, transform_indices = @transform_1, window_bounds = array<i64: 1, 128>}, {pipeline_mode = #tpu.pipeline_mode<synchronous>, transform_indices = @transform_2, window_bounds = array<i64: 1, 128>}, {pipeline_mode = #tpu.pipeline_mode<synchronous>, transform_indices = @transform_3, window_bounds = array<i64: 128, 128>}, {pipeline_mode = #tpu.pipeline_mode<synchronous>, transform_indices = @transform_4, window_bounds = array<i64: 1, 128>}, {pipeline_mode = #tpu.pipeline_mode<synchronous>, transform_indices = @transform_5, window_bounds = array<i64: 128, 128>}, {pipeline_mode = #tpu.pipeline_mode<synchronous>, transform_indices = @transform_6, window_bounds = array<i64: 1, 128>}, {transform_indices = @transform_7, window_bounds = array<i64: 16, 128>}]} {
    %c0 = arith.constant 0 : index
    %c0_0 = arith.constant 0 : index
    %0 = vector.load %arg1[%c0, %c0_0] : memref<16x128xf32, #tpu.memory_space<vmem>>, vector<16x128xf32>
    %cst = arith.constant dense<0.000000e+00> : vector<16xf32>
    %1 = vector.multi_reduction <add>, %0, %cst [1] : vector<16x128xf32> to vector<16xf32>
    %2 = vector.shape_cast %1 : vector<16xf32> to vector<16x1xf32>
    %cst_1 = arith.constant 1.280000e+02 : f32
    %3 = vector.broadcast %cst_1 : f32 to vector<16x1xf32>
    %4 = arith.divf %2, %3 : vector<16x1xf32>
    %5 = arith.mulf %0, %0 : vector<16x128xf32>
    %cst_2 = arith.constant dense<0.000000e+00> : vector<16xf32>
    %6 = vector.multi_reduction <add>, %5, %cst_2 [1] : vector<16x128xf32> to vector<16xf32>
    %7 = vector.shape_cast %6 : vector<16xf32> to vector<16x1xf32>
    %cst_3 = arith.constant 1.280000e+02 : f32
    %8 = vector.broadcast %cst_3 : f32 to vector<16x1xf32>
    %9 = arith.divf %7, %8 : vector<16x1xf32>
    %10 = arith.mulf %4, %4 : vector<16x1xf32>
    %11 = arith.subf %9, %10 : vector<16x1xf32>
    %cst_4 = arith.constant 0.000000e+00 : f32
    %12 = vector.broadcast %cst_4 : f32 to vector<16x1xf32>
    %13 = arith.maximumf %11, %12 : vector<16x1xf32>
    %14 = vector.broadcast %4 : vector<16x1xf32> to vector<16x128xf32>
    %15 = arith.subf %0, %14 : vector<16x128xf32>
    %cst_5 = arith.constant 9.99999974E-6 : f32
    %16 = vector.broadcast %cst_5 : f32 to vector<16x1xf32>
    %17 = arith.addf %13, %16 : vector<16x1xf32>
    %18 = math.rsqrt %17 : vector<16x1xf32>
    %19 = vector.broadcast %18 : vector<16x1xf32> to vector<16x128xf32>
    %20 = arith.mulf %15, %19 : vector<16x128xf32>
    %c0_6 = arith.constant 0 : index
    %c0_7 = arith.constant 0 : index
    %21 = vector.load %arg2[%c0_6, %c0_7] : memref<1x128xf32, #tpu.memory_space<vmem>>, vector<1x128xf32>
    %22 = vector.broadcast %21 : vector<1x128xf32> to vector<16x128xf32>
    %23 = arith.mulf %20, %22 : vector<16x128xf32>
    %c0_8 = arith.constant 0 : index
    %c0_9 = arith.constant 0 : index
    %24 = vector.load %arg3[%c0_8, %c0_9] : memref<1x128xf32, #tpu.memory_space<vmem>>, vector<1x128xf32>
    %25 = vector.broadcast %24 : vector<1x128xf32> to vector<16x128xf32>
    %26 = arith.addf %23, %25 : vector<16x128xf32>
    %c0_10 = arith.constant 0 : index
    %c0_11 = arith.constant 0 : index
    %27 = vector.load %arg4[%c0_10, %c0_11] : memref<128x128xbf16, #tpu.memory_space<vmem>>, vector<128x128xbf16>
    %28 = arith.truncf %26 : vector<16x128xf32> to vector<16x128xbf16>
    %cst_12 = arith.constant dense<0.000000e+00> : vector<16x128xf32>
    %29 = tpu.matmul %28, %27, %cst_12 {dimension_numbers = #tpu.dot_dimension_numbers<[1], [0], [0], [1], [0, 0, 1, 1], [], []>} : vector<16x128xbf16>, vector<128x128xbf16>, vector<16x128xf32> -> vector<16x128xf32>
    %c0_13 = arith.constant 0 : index
    %c0_14 = arith.constant 0 : index
    %30 = vector.load %arg5[%c0_13, %c0_14] : memref<1x128xf32, #tpu.memory_space<vmem>>, vector<1x128xf32>
    %31 = vector.broadcast %30 : vector<1x128xf32> to vector<16x128xf32>
    %32 = arith.addf %29, %31 : vector<16x128xf32>
    %cst_15 = arith.constant 5.000000e-01 : f32
    %33 = vector.broadcast %cst_15 : f32 to vector<16x128xf32>
    %34 = arith.mulf %33, %32 : vector<16x128xf32>
    %cst_16 = arith.constant 0.707106769 : f32
    %35 = vector.broadcast %cst_16 : f32 to vector<16x128xf32>
    %36 = arith.mulf %32, %35 : vector<16x128xf32>
    %37 = math.erf %36 : vector<16x128xf32>
    %cst_17 = arith.constant 1.000000e+00 : f32
    %38 = vector.broadcast %cst_17 : f32 to vector<16x128xf32>
    %39 = arith.addf %38, %37 : vector<16x128xf32>
    %40 = arith.mulf %34, %39 : vector<16x128xf32>
    %c0_18 = arith.constant 0 : index
    %c0_19 = arith.constant 0 : index
    %41 = vector.load %arg6[%c0_18, %c0_19] : memref<128x128xbf16, #tpu.memory_space<vmem>>, vector<128x128xbf16>
    %42 = arith.truncf %40 : vector<16x128xf32> to vector<16x128xbf16>
    %cst_20 = arith.constant dense<0.000000e+00> : vector<16x128xf32>
    %43 = tpu.matmul %42, %41, %cst_20 {dimension_numbers = #tpu.dot_dimension_numbers<[1], [0], [0], [1], [0, 0, 1, 1], [], []>} : vector<16x128xbf16>, vector<128x128xbf16>, vector<16x128xf32> -> vector<16x128xf32>
    %c0_21 = arith.constant 0 : index
    %c0_22 = arith.constant 0 : index
    %44 = vector.load %arg7[%c0_21, %c0_22] : memref<1x128xf32, #tpu.memory_space<vmem>>, vector<1x128xf32>
    %45 = vector.broadcast %44 : vector<1x128xf32> to vector<16x128xf32>
    %46 = arith.addf %43, %45 : vector<16x128xf32>
    %cst_23 = arith.constant 5.000000e-01 : f32
    %47 = vector.broadcast %cst_23 : f32 to vector<16x128xf32>
    %48 = arith.mulf %47, %46 : vector<16x128xf32>
    %cst_24 = arith.constant 0.707106769 : f32
    %49 = vector.broadcast %cst_24 : f32 to vector<16x128xf32>
    %50 = arith.mulf %46, %49 : vector<16x128xf32>
    %51 = math.erf %50 : vector<16x128xf32>
    %cst_25 = arith.constant 1.000000e+00 : f32
    %52 = vector.broadcast %cst_25 : f32 to vector<16x128xf32>
    %53 = arith.addf %52, %51 : vector<16x128xf32>
    %54 = arith.mulf %48, %53 : vector<16x128xf32>
    %c0_26 = arith.constant 0 : index
    %c0_27 = arith.constant 0 : index
    %55 = vector.load %arg8[%c0_26, %c0_27] : memref<16x128xf32, #tpu.memory_space<vmem>>, vector<16x128xf32>
    tpu.vector_store %arg8[%c0_26, %c0_27], %54 {strides = array<i32>} : memref<16x128xf32, #tpu.memory_space<vmem>>, vector<16x128xf32>,
    return
  }
  func.func @transform_0(%arg0: i32) -> (i32, i32) {
    %c0_i32 = arith.constant 0 : i32
    %c0_i32_0 = arith.constant 0 : i32
    return %arg0, %c0_i32 : i32, i32
  }
  func.func @transform_1(%arg0: i32) -> (i32, i32) {
    %c0_i32 = arith.constant 0 : i32
    %c0_i32_0 = arith.constant 0 : i32
    %c0_i32_1 = arith.constant 0 : i32
    return %c0_i32, %c0_i32_0 : i32, i32
  }
  func.func @transform_2(%arg0: i32) -> (i32, i32) {
    %c0_i32 = arith.constant 0 : i32
    %c0_i32_0 = arith.constant 0 : i32
    %c0_i32_1 = arith.constant 0 : i32
    return %c0_i32, %c0_i32_0 : i32, i32
  }
  func.func @transform_3(%arg0: i32) -> (i32, i32) {
    %c0_i32 = arith.constant 0 : i32
    %c0_i32_0 = arith.constant 0 : i32
    %c0_i32_1 = arith.constant 0 : i32
    return %c0_i32, %c0_i32_0 : i32, i32
  }
  func.func @transform_4(%arg0: i32) -> (i32, i32) {
    %c0_i32 = arith.constant 0 : i32
    %c0_i32_0 = arith.constant 0 : i32
    %c0_i32_1 = arith.constant 0 : i32
    return %c0_i32, %c0_i32_0 : i32, i32
  }
  func.func @transform_5(%arg0: i32) -> (i32, i32) {
    %c0_i32 = arith.constant 0 : i32
    %c0_i32_0 = arith.constant 0 : i32
    %c0_i32_1 = arith.constant 0 : i32
    return %c0_i32, %c0_i32_0 : i32, i32
  }
  func.func @transform_6(%arg0: i32) -> (i32, i32) {
    %c0_i32 = arith.constant 0 : i32
    %c0_i32_0 = arith.constant 0 : i32
    %c0_i32_1 = arith.constant 0 : i32
    return %c0_i32, %c0_i32_0 : i32, i32
  }
  func.func @transform_7(%arg0: i32) -> (i32, i32) {
    %c0_i32 = arith.constant 0 : i32
    %c0_i32_0 = arith.constant 0 : i32
    return %arg0, %c0_i32 : i32, i32
  }
}

</mosaic_0001>

<bundles_post_ra>
// kernel: feed_forward.1
= control target key start
LH: loop header
LB: loop body
LE: loop exit
PB: predicated region body
PF: predicated region fallthrough
CT: control target
= control target key end

     0   :  { %12 = vsyncpa [#allocation3], 0  ;;  %s690_s0 = inlined_call_operand.hbm [shape: f32[16,128], index: 0, kind: input, shape index: {}]   ;;  %s691_s1 = inlined_call_operand.vmem [shape: f32[1,128], index: 1, kind: input, shape index: {}]   ;;  %s692_s2 = inlined_call_operand.vmem [shape: f32[1,128], index: 2, kind: input, shape index: {}]   ;;  %s693_s3 = inlined_call_operand.hbm [shape: bf16[128,128], index: 3, kind: input, shape index: {}]   ;;  %s694_s4 = inlined_call_operand.vmem [shape: f32[1,128], index: 4, kind: input, shape index: {}]   ;;  %s695_s5 = inlined_call_operand.hbm [shape: bf16[128,128], index: 5, kind: input, shape index: {}]   ;;  %s696_s6 = inlined_call_operand.vmem [shape: f32[1,128], index: 6, kind: input, shape index: {}]   ;;  %s697_s7 = inlined_call_operand.hbm [shape: f32[16,128], index: 7, kind: output, shape index: {}]  }
   0x1   :  { %13 = vsyncpa [#allocation6], 0 }
   0x2   :  { %14 = vsyncpa [#allocation4], 0  ;;  %s586_s24 = smov [#allocation5]  }
   0x3   :  { %s36_s25 = sshll.u32 %s586_s24, 4  ;;  %s37_s25 = int_to_ptr.vmem [resolvable:$true] %s36_s25 }
   0x4   :  { %s508_s26 = scalar_lea.vmem %s37_s25, 1024  ;;  %p513_p1 = scmp.lt.s32.totalorder %s37_s25, %s37_s25 }
   0x5   :  { %p509_p0 = scmp.ne.s32.totalorder %s37_s25, %s508_s26  ;;  %p514_p2 = scmp.lt.s32.totalorder %s508_s26, %s508_s26 }
   0x7   :  { %p515_p3 = por %p514_p2, %p513_p1 }
   0x9   :  { %p516_p4 = pnand %p515_p3, %p509_p0 }
   0xb   :  { %519 = shalt.err (!%p516_p4)
}
   0xc   :  { %s587_s27 = smov 64   ;;  %s588_s28 = smov 4  }
   0xd   :  { %42 = dma.hbm_to_vmem [thread:$0]  %s693_s3, 1024, %s37_s25, [#allocation6], %s587_s27, %s587_s27, %s588_s28  }
   0xe   :  { %s589_s8 = smov [#allocation2]  }
   0xf   :  { %s20_s9 = sshll.u32 %s589_s8, 4  ;;  %s21_s9 = int_to_ptr.vmem [resolvable:$true] %s20_s9 }
  0x10   :  { %s528_s10 = scalar_lea.vmem %s21_s9, 256  ;;  %p533_p6 = scmp.lt.s32.totalorder %s21_s9, %s21_s9 }
  0x11   :  { %p529_p5 = scmp.ne.s32.totalorder %s21_s9, %s528_s10  ;;  %p534_p7 = scmp.lt.s32.totalorder %s528_s10, %s528_s10 }
  0x13   :  { %p535_p8 = por %p534_p7, %p533_p6 }
  0x15   :  { %p536_p9 = pnand %p535_p8, %p529_p5 }
  0x17   :  { %539 = shalt.err (!%p536_p9)
}
  0x18   :  { %s590_s11 = smov 128   ;;  %s591_s12 = smov 8  }
  0x19   :  { %26 = dma.hbm_to_vmem [thread:$0]  %s690_s0, 256, %s21_s9, [#allocation3], %s590_s11, %s590_s11, %s591_s12  }
  0x1a   :  { %s592_s3 = smov [#allocation7]  }
  0x1b   :  { %s50_s15 = sshll.u32 %s592_s3, 4  ;;  %s51_s15 = int_to_ptr.vmem [resolvable:$true] %s50_s15 }
  0x1c   :  { %s548_s16 = scalar_lea.vmem %s51_s15, 1024  ;;  %p553_p11 = scmp.lt.s32.totalorder %s51_s15, %s51_s15 }
  0x1d   :  { %p549_p10 = scmp.ne.s32.totalorder %s51_s15, %s548_s16  ;;  %p554_p12 = scmp.lt.s32.totalorder %s548_s16, %s548_s16 }
  0x1f   :  { %p555_p13 = por %p554_p12, %p553_p11 }
  0x21   :  { %p556_p0 = pnand %p555_p13, %p549_p10 }
  0x23   :  { %559 = shalt.err (!%p556_p0)
}
  0x24   :  { %56 = dma.hbm_to_vmem [thread:$0]  %s695_s5, 1024, %s51_s15, [#allocation6], %s587_s27, %s587_s27, %s588_s28  }
  0x25   :  { %580 = dma.done.wait [#allocation3], 256  }
  0x26   :  { %581 = vsyncadd [#allocation3], 4294967040 }
  0x27   :  { %582 = dma.done.wait [#allocation6], 2048  }
  0x28   :  { %583 = vsyncadd [#allocation6], 4294965248  ;;  %v69_v0 = vld [vmem:[#allocation2] sm:$0xff]  ;;  %v648_v1 = vld [vmem:[#allocation2 + $0x8] sm:$0xff]  ;;  %v593_v5 = vmov 0.0   ;;  %vm594_vm0 = vmmov 0  }
  0x29   :  { %71 = vadd.xlane.f32.xlu0 %v69_v0  ;;  %v78_v2 = vmul.f32 %v69_v0, %v69_v0  ;;  %v79_v3 = vmul.f32 %v648_v1, %v648_v1  ;;  %v472_v4 = vld [vmem:[#allocation5 + $0x38] sm:$0xff]   ;;  %422 = vmatprep.subr.bf16.mxu0 %v593_v5  ;;  %v473_v6 = vld [vmem:[#allocation5 + $0x30] sm:$0xff]   ;;  %v474_v7 = vld [vmem:[#allocation5 + $0x28] sm:$0xff]   ;;  %s595_s22 = smov [#allocation8]  }
  0x2a   :  { %442 = vmatprep.subr.bf16.mxu1 %v593_v5  ;;  %423 = vmatpush3.bf16.msra.mxu0 %v472_v4  ;;  %v475_v8 = vld [vmem:[#allocation5 + $0x20] sm:$0xff]   ;;  %v476_v9 = vld [vmem:[#allocation5 + $0x18] sm:$0xff]   ;;  %v477_v10 = vld [vmem:[#allocation5 + $0x10] sm:$0xff]   ;;  %s371_s23 = sshll.u32 %s595_s22, 4  ;;  %s372_s23 = int_to_ptr.vmem [resolvable:$true] %s371_s23 }
  0x2b   :  { %80 = vadd.xlane.f32.xlu1 %v78_v2  ;;  %424 = vmatprep.subr.bf16.mxu0 %v593_v5  ;;  %v478_v11 = vld [vmem:[#allocation5 + $0x8] sm:$0xff]   ;;  %v479_v12 = vld [vmem:[#allocation5] sm:$0xff]   ;;  %v480_v13 = vld [vmem:[#allocation7 + $0x38] sm:$0xff]   ;;  %p565_p2 = scmp.lt.s32.totalorder %s372_s23, %s372_s23 }
  0x2c   :  { %438 = vmatprep.mubr.msk.bf16.mxu0 %vm594_vm0, %v593_v5  ;;  %458 = vmatprep.mubr.msk.bf16.mxu1 %vm594_vm0, %v593_v5  ;;  %v384_v33 = vld [vmem:[%s691_s1] ss:$0 sm:$0xff]  ;;  %v482_v44 = vld [vmem:[#allocation7 + $0x28] sm:$0xff]   ;;  %v483_v45 = vld [vmem:[#allocation7 + $0x20] sm:$0xff]  }
  0x2d   :  { %73 = vadd.xlane.f32.xlu0 %v648_v1  ;;  %443 = vmatpush3.bf16.msra.mxu1 %v480_v13  ;;  %v385_v38 = vld [vmem:[%s692_s2] ss:$0 sm:$0xff]  ;;  %v484_v46 = vld [vmem:[#allocation7 + $0x18] sm:$0xff]   ;;  %v486_v48 = vld [vmem:[#allocation7 + $0x8] sm:$0xff]  }
  0x2e   :  { %425 = vmatpush3.bf16.msra.mxu0 %v473_v6  ;;  %444 = vmatprep.subr.bf16.mxu1 %v593_v5  ;;  %v481_v43 = vld [vmem:[#allocation7 + $0x30] sm:$0xff]   ;;  %v487_v49 = vld [vmem:[#allocation7] sm:$0xff]  }
  0x2f   :  { %82 = vadd.xlane.f32.xlu1 %v79_v3  ;;  %426 = vmatprep.subr.bf16.mxu0 %v593_v5  ;;  %v485_v47 = vld [vmem:[#allocation7 + $0x10] sm:$0xff]  }
  0x30   :  { %v386_v50 = vld [vmem:[%s694_s4] ss:$0 sm:$0xff] }
  0x31   :  { %445 = vmatpush3.bf16.msra.mxu1 %v481_v43  ;;  %v395_v4 = vld [vmem:[%s696_s6] ss:$0 sm:$0xff]  ;;  %s560_s6 = scalar_lea.vmem %s372_s23, 256 }
  0x32   :  { %427 = vmatpush3.bf16.msra.mxu0 %v474_v7  ;;  %446 = vmatprep.subr.bf16.mxu1 %v593_v5  ;;  %p561_p1 = scmp.ne.s32.totalorder %s372_s23, %s560_s6  ;;  %p566_p3 = scmp.lt.s32.totalorder %s560_s6, %s560_s6 }
  0x33   :  { %428 = vmatprep.subr.bf16.mxu0 %v593_v5 }
  0x34   :  { %p567_p4 = por %p566_p3, %p565_p2 }
  0x35   :  { %447 = vmatpush3.bf16.msra.mxu1 %v482_v44 }
  0x36   :  { %429 = vmatpush3.bf16.msra.mxu0 %v475_v8  ;;  %448 = vmatprep.subr.bf16.mxu1 %v593_v5  ;;  %p568_p5 = pnand %p567_p4, %p561_p1 }
  0x37   :  { %430 = vmatprep.subr.bf16.mxu0 %v593_v5 }
  0x39   :  { %449 = vmatpush3.bf16.msra.mxu1 %v483_v45 }
  0x3a   :  { %431 = vmatpush3.bf16.msra.mxu0 %v476_v9  ;;  %450 = vmatprep.subr.bf16.mxu1 %v593_v5 }
  0x3b   :  { %432 = vmatprep.subr.bf16.mxu0 %v593_v5 }
  0x3d   :  { %451 = vmatpush3.bf16.msra.mxu1 %v484_v46 }
  0x3e   :  { %433 = vmatpush3.bf16.msra.mxu0 %v477_v10  ;;  %452 = vmatprep.subr.bf16.mxu1 %v593_v5 }
  0x3f   :  { %434 = vmatprep.subr.bf16.mxu0 %v593_v5 }
  0x41   :  { %453 = vmatpush3.bf16.msra.mxu1 %v485_v47 }
  0x42   :  { %435 = vmatpush3.bf16.msra.mxu0 %v478_v11  ;;  %454 = vmatprep.subr.bf16.mxu1 %v593_v5 }
  0x43   :  { %436 = vmatprep.subr.bf16.mxu0 %v593_v5 }
  0x45   :  { %455 = vmatpush3.bf16.msra.mxu1 %v486_v48 }
  0x46   :  { %437 = vmatpush3.bf16.msra.mxu0 %v479_v12  ;;  %456 = vmatprep.subr.bf16.mxu1 %v593_v5 }
  0x49   :  { %457 = vmatpush3.bf16.msra.mxu1 %v487_v49 }
  0xb2   :  { %v72_v14 = vpop.xlane.xlu0 %71 }
  0xb3   :  { %v76_v15 = vmul.f32 0.0078125, %v72_v14 }
  0xb4   :  { %v81_v16 = vpop.xlane.xlu1 %80 }
  0xb5   :  { %v86_v17 = vmul.f32 %v76_v15, %v76_v15  ;;  %v84_v18 = vmul.f32 0.0078125, %v81_v16  ;;  %v92_v30 = vsub.f32 %v69_v0, %v76_v15 }
  0xb6   :  { %v74_v19 = vpop.xlane.xlu0 %73 }
  0xb7   :  { %v88_v20 = vsub.f32 %v84_v18, %v86_v17  ;;  %v77_v21 = vmul.f32 0.0078125, %v74_v19 }
  0xb8   :  { %v83_v22 = vpop.xlane.xlu1 %82 }
  0xb9   :  { %v90_v23 = vmax.f32 %v88_v20, 0.0  ;;  %v87_v24 = vmul.f32 %v77_v21, %v77_v21  ;;  %v85_v25 = vmul.f32 0.0078125, %v83_v22  ;;  %v93_v34 = vsub.f32 %v648_v1, %v77_v21 }
  0xbb   :  { %v94_v26 = vadd.f32 1e-05, %v90_v23  ;;  %v89_v27 = vsub.f32 %v85_v25, %v87_v24 }
  0xbd   :  { %488 = vrsqrt.f32 %v94_v26  ;;  %v91_v28 = vmax.f32 %v89_v27, 0.0 }
  0xbf   :  { %v95_v29 = vadd.f32 1e-05, %v91_v28 }
  0xc1   :  { %490 = vrsqrt.f32 %v95_v29 }
  0xca   :  { %v489_v31 = vpop.eup %488 }
  0xcb   :  { %v98_v32 = vmul.f32 %v489_v31, %v92_v30 }
  0xcd   :  { %v107_v37 = vmul.f32 %v384_v33, %v98_v32 }
  0xce   :  { %v491_v35 = vpop.eup %490 }
  0xcf   :  { %v99_v36 = vmul.f32 %v491_v35, %v93_v34  ;;  %v116_v40 = vadd.f32 %v385_v38, %v107_v37 }
  0xd1   :  { %v108_v39 = vmul.f32 %v384_v33, %v99_v36 }
  0xd3   :  { %v117_v41 = vadd.f32 %v385_v38, %v108_v39 }
  0xd5   :  { %v134_v42 = vpack.c.bf16 %v117_v41, %v116_v40 }
  0xd7   :  { %439 = vmatmul.mubr.bf16.vlgmr.msra.gmra.mxu0 %v134_v42 }
 0x197   :  { %v224_v51 = vpop.f32.mrf.mxu0 }
 0x198   :  { %v225_v52 = vadd.f32 %v386_v50, %v224_v51 }
 0x199   :  { %v440_v53 = vpop.f32.mrf.mxu0 }
 0x19a   :  { %v233_v54 = vmul.f32 0.70710677, %v225_v52  ;;  %v231_v62 = vmul.f32 0.5, %v225_v52 }
 0x19b   :  { %v227_v55 = vpop.f32.mrf.mxu0 }
 0x19c   :  { %492 = verf.f32 %v233_v54  ;;  %v228_v56 = vadd.f32 %v386_v50, %v227_v55 }
 0x19d   :  { %v441_v57 = vpop.f32.mrf.mxu0 }
 0x19e   :  { %v234_v58 = vmul.f32 0.70710677, %v228_v56  ;;  %v232_v63 = vmul.f32 0.5, %v228_v56 }
 0x1a0   :  { %494 = verf.f32 %v234_v58 }
 0x1a9   :  { %v493_v59 = vpop.eup %492 }
 0x1aa   :  { %v237_v60 = vadd.f32 1.0, %v493_v59 }
 0x1ac   :  { %v239_v1 = vmul.f32 %v237_v60, %v231_v62 }
 0x1ad   :  { %v495_v61 = vpop.eup %494 }
 0x1ae   :  { %v238_v0 = vadd.f32 1.0, %v495_v61 }
 0x1b0   :  { %v240_v2 = vmul.f32 %v238_v0, %v232_v63 }
 0x1b2   :  { %v257_v3 = vpack.c.bf16 %v240_v2, %v239_v1 }
 0x1b4   :  { %459 = vmatmul.mubr.bf16.vlgmr.msra.gmra.mxu1 %v257_v3 }
 0x274   :  { %v347_v5 = vpop.f32.mrf.mxu1 }
 0x275   :  { %v348_v6 = vadd.f32 %v395_v4, %v347_v5 }
 0x276   :  { %v460_v7 = vpop.f32.mrf.mxu1 }
 0x277   :  { %v356_v8 = vmul.f32 0.70710677, %v348_v6  ;;  %v354_v14 = vmul.f32 0.5, %v348_v6 }
 0x278   :  { %v350_v9 = vpop.f32.mrf.mxu1 }
 0x279   :  { %496 = verf.f32 %v356_v8  ;;  %v351_v10 = vadd.f32 %v395_v4, %v350_v9 }
 0x27a   :  { %v461_v11 = vpop.f32.mrf.mxu1 }
 0x27b   :  { %v357_v12 = vmul.f32 0.70710677, %v351_v10  ;;  %v355_v18 = vmul.f32 0.5, %v351_v10 }
 0x27d   :  { %498 = verf.f32 %v357_v12 }
 0x286   :  { %v497_v13 = vpop.eup %496 }
 0x287   :  { %v360_v15 = vadd.f32 1.0, %v497_v13 }
 0x289   :  { %v362_v16 = vmul.f32 %v360_v15, %v354_v14 }
 0x28a   :  { %v499_v17 = vpop.eup %498 }
 0x28b   :  { %364 = vst [vmem:[#allocation8] sm:$0xff] %v362_v16  ;;  %v361_v19 = vadd.f32 1.0, %v499_v17 }
 0x28d   :  { %v363_v20 = vmul.f32 %v361_v19, %v355_v18 }
 0x28f   :  { %365 = vst [vmem:[#allocation8 + $0x8] sm:$0xff] %v363_v20 }
 0x290   :  { %571 = shalt.err (!%p568_p5)
}
 0x291   :  { %377 = dma.vmem_to_hbm [thread:$0]  %s372_s23, 256, %s697_s7, [#allocation4], %s590_s11, %s590_s11, %s591_s12  }
 0x292   :  { %584 = dma.done.wait [#allocation4], 256  }
 0x293   :  { %585 = vsyncadd [#allocation4], 4294967040 }
 0x294   :  { %381 = vsyncpa [#allocation3], 1 }
 0x295   :  { %382 = vsyncpa [#allocation6], 1 }
 0x296   :  { %383 = vsyncpa [#allocation4], 1 }

</bundles_post_ra>
